<compile_context>
chip_gen: v5e
topology: v5e:2x2
jax: 0.10.0
libtpu: 0.0.40
codegen_flags: <defaults>
</compile_context>

<pallas_src>
import functools

import jax
import jax.numpy as jnp
import numpy as np
from jax import lax
from jax.experimental import pallas as pl
from jax.experimental.pallas import tpu as pltpu

LOWER = 0.01            # self.lower_bound
UPPER = 100.0 - 0.01    # self.upper_bound


def _epidemic_rollout_kernel(rows_ref, wslab_ref, tab_ref, out_ref):
    """Fully-fused T-step policy rollout (single invocation, no grid)."""
    H = rows_ref.shape[1]
    Bp1, NT = tab_ref.shape
    B = Bp1 - 1
    T = out_ref.shape[1] // 2

    # ---- prologue: load & slice every constant exactly once ----------------
    rows = rows_ref[...]                                   # (8, H)
    b1, w2, be1 = rows[0:1, :], rows[1:2, :], rows[2:3, :]
    we1_xi, we1_y, be2 = rows[3:4, :], rows[4:5, :], rows[5:6, :]
    b2 = rows[6:7, 0:1]                                    # (1, 1)

    wslab = wslab_ref[...]                                 # (2H, H)
    w1, we2 = wslab[0:H, :], wslab[H:, :]

    tab = tab_ref[...]                                     # (B+1, NT)
    ts, ys = tab[0:1, :], tab[1:, :]                       # (1, NT), (B, NT)
    iota = lax.broadcasted_iota(jnp.int32, (B, NT), 1)     # hoisted out of the loop

    def sigmoid(x):
        # 0.5*(tanh(0.5x)+1): single EUP op on the serial chain.
        return 0.5 * (jnp.tanh(0.5 * x) + 1.0)

    def nearest_y(xi_b):
        # exact torch argmin with first-occurrence tie-break, then one-hot gather
        d = jnp.abs(xi_b - ts)                                             # (B, NT)
        dmin = jnp.min(d, axis=-1, keepdims=True)                          # (B, 1)
        cand = jnp.where(d == dmin, iota, NT)
        nearest = jnp.min(cand, axis=-1, keepdims=True)                    # (B, 1)
        return jnp.sum(jnp.where(cand == nearest, ys, 0.0),
                       axis=-1, keepdims=True)                             # (B, 1)

    def encode(xi_u_b, y_b):
        # design-net history encoder MLP for one (xi_untransformed, y) pair
        pre = xi_u_b * we1_xi + y_b * we1_y + be1                          # (B, H)
        return jnp.maximum(
            jnp.dot(jnp.maximum(pre, 0.0), we2,
                    preferred_element_type=jnp.float32) + be2, 0.0)        # (B, H)

    xi_u_cols, y_cols = [], []

    # ---- peeled t = 0: pooled == 0, so skip the w1 matmul entirely ----------
    h0 = jnp.maximum(b1, 0.0)                                              # (1, H)
    xi_u0 = jnp.broadcast_to(
        jnp.sum(h0 * w2, axis=-1, keepdims=True) + b2, (B, 1))             # (B, 1)
    xi0 = LOWER + sigmoid(xi_u0) * (UPPER - LOWER)
    y0 = nearest_y(xi0)
    pooled = encode(xi_u0, y0)                                             # (B, H)
    xi_u_cols.append(xi_u0)
    y_cols.append(y0)

    # T is a small static trip count -> fully unrolled (steps are strictly serial).
    # TODO(synk): switch to lax.fori_loop(..., unroll=4) if T grows beyond ~16-32.
    for _ in range(1, T):
        h = jnp.maximum(
            jnp.dot(pooled, w1, preferred_element_type=jnp.float32) + b1, 0.0)  # (B, H)
        xi_u = jnp.sum(h * w2, axis=-1, keepdims=True) + b2                     # (B, 1)
        xi = LOWER + sigmoid(xi_u) * (UPPER - LOWER)
        y = nearest_y(xi)
        pooled = pooled + encode(xi_u, y)
        xi_u_cols.append(xi_u)
        y_cols.append(y)

    # single lane-dense store at the very end -> one output writeback DMA
    out_ref[...] = jnp.concatenate(xi_u_cols + y_cols, axis=-1)            # (B, 2T)


@functools.partial(jax.jit, static_argnames=("T",))
def epidemic_forward(params, simdata, indices, *, T):
    """Pallas version of Epidemic.forward(indices): run the policy for T steps."""
    # _get_batch_data (index gathers; plain JAX glue fused by jit around the kernel)
    ys_sel = jnp.take(simdata["ys"], indices, axis=1)                # (Nt, B)
    theta = jnp.take(simdata["prior_samples"], indices, axis=0)      # (B, 2)
    ts_inner = simdata["ts"][1:-1][None, :]                          # (1, NT)
    ysT = jnp.transpose(ys_sel[1:-1])                                # (B, NT)
    B, NT = ysT.shape
    H = params["w1"].shape[0]

    # pack 9 tiny parameter arrays + ts into 2 slabs + 1 lookup table -> 3 input DMAs
    rows = jnp.concatenate(
        [params["b1"], params["w2"], params["be1"], params["we1_xi"],
         params["we1_y"], params["be2"],
         jnp.broadcast_to(params["b2"], (1, H)),
         jnp.zeros((1, H), jnp.float32)], axis=0)                    # (8, H)
    wslab = jnp.concatenate([params["w1"], params["we2"]], axis=0)   # (2H, H)
    tab = jnp.concatenate([ts_inner, ysT], axis=0)                   # (B+1, NT)

    vmem = pl.BlockSpec(memory_space=pltpu.MemorySpace.VMEM)
    cost = pl.CostEstimate(
        flops=int(T * (4 * B * H * H + 8 * B * NT)),
        transcendentals=int(T * B),
        bytes_accessed=int(4 * (rows.size + wslab.size + tab.size + B * 2 * T)),
    )

    out = pl.pallas_call(
        _epidemic_rollout_kernel,
        out_shape=jax.ShapeDtypeStruct((B, 2 * T), jnp.float32),
        in_specs=[vmem, vmem, vmem],
        out_specs=vmem,
        cost_estimate=cost,
    )(rows, wslab, tab)

    # reshape to torch-style (T, B, 1) stacks; recompute xi outside the kernel.
    xi_u = jnp.transpose(out[:, :T])[:, :, None]                     # (T, B, 1)
    y = jnp.transpose(out[:, T:])[:, :, None]                        # (T, B, 1)
    xi = LOWER + jax.nn.sigmoid(xi_u) * (UPPER - LOWER)              # (T, B, 1)

    # forward() returns (theta, designs, observations); also expose untransformed designs
    return theta, xi_u, xi, y


def reference_forward(params, simdata, indices, T):
    """Pure-JAX reference with identical semantics (for correctness check)."""
    ys_sel = jnp.take(simdata["ys"], indices, axis=1)
    ts_inner = simdata["ts"][1:-1][None, :]
    ysT = jnp.transpose(ys_sel[1:-1])
    B, _ = ysT.shape
    H = params["w1"].shape[0]
    pooled = jnp.zeros((B, H), jnp.float32)
    xis_u, xis, ys = [], [], []
    for _ in range(T):
        h = jnp.maximum(pooled @ params["w1"] + params["b1"], 0.0)
        xi_u = jnp.sum(h * params["w2"], axis=-1, keepdims=True) + params["b2"]
        xi = LOWER + jax.nn.sigmoid(xi_u) * (UPPER - LOWER)
        nearest = jnp.argmin(jnp.abs(xi - ts_inner), axis=-1)
        y = ysT[jnp.arange(B), nearest][:, None]
        pre = xi_u * params["we1_xi"] + y * params["we1_y"] + params["be1"]
        enc = jnp.maximum(jnp.maximum(pre, 0.0) @ params["we2"] + params["be2"], 0.0)
        pooled = pooled + enc
        xis_u.append(xi_u); xis.append(xi); ys.append(y)
    return jnp.stack(xis_u), jnp.stack(xis), jnp.stack(ys)


if __name__ == "__main__":
    T, B, H = 4, 8, 32
    NUM_SAMPLES, NT_FULL = 16, 130   # ts[1:-1] -> 128 inner time points (lane-dense)

    key = jax.random.PRNGKey(0)
    ks = jax.random.split(key, 14)

    # ---- deterministic synthetic SIMDATA (pre-simulated SIR SDE trajectories) ----
    ts = jnp.linspace(0.0, 100.0, NT_FULL).astype(jnp.float32)
    peaks = jax.random.uniform(ks[0], (NUM_SAMPLES,), minval=10.0, maxval=80.0)
    widths = jax.random.uniform(ks[1], (NUM_SAMPLES,), minval=5.0, maxval=25.0)
    ys = 0.5 * jnp.exp(-((ts[:, None] - peaks[None, :]) / widths[None, :]) ** 2)
    ys = (ys + 0.01 * jax.random.uniform(ks[2], (NT_FULL, NUM_SAMPLES))).astype(jnp.float32)
    prior_samples = jnp.exp(
        jnp.log(jnp.array([0.5, 0.1], jnp.float32))
        + 0.5 * jax.random.normal(ks[3], (NUM_SAMPLES, 2))
    ).astype(jnp.float32)
    simdata = {"ys": ys, "ts": ts, "prior_samples": prior_samples,
               "dt": ts[1] - ts[0], "num_samples": NUM_SAMPLES}

    # ---- deterministic synthetic design-net parameters ----
    # TODO(synk): the original design_net is an external Pyro policy module; a
    # deterministic set-pooling MLP stands in for it here.
    def init(k, shape, scale):
        return (scale * jax.random.normal(k, shape)).astype(jnp.float32)

    params = {
        "w1": init(ks[4], (H, H), 1.0 / np.sqrt(H)),
        "b1": init(ks[5], (1, H), 0.1),
        "w2": init(ks[6], (1, H), 1.0 / np.sqrt(H)),
        "b2": init(ks[7], (1, 1), 0.1),
        "we1_xi": init(ks[8], (1, H), 0.5),
        "we1_y": init(ks[9], (1, H), 0.5),
        "be1": init(ks[10], (1, H), 0.1),
        "we2": init(ks[11], (H, H), 1.0 / np.sqrt(H)),
        "be2": init(ks[12], (1, H), 0.1),
    }

    indices = jax.random.randint(ks[13], (B,), 0, NUM_SAMPLES)

    theta, xi_u, xi, y = epidemic_forward(params, simdata, indices, T=T)
    jax.block_until_ready((theta, xi_u, xi, y))

    ref_xi_u, ref_xi, ref_y = reference_forward(params, simdata, indices, T)
    assert theta.shape == (B, 2)
    assert xi_u.shape == xi.shape == y.shape == (T, B, 1)
    np.testing.assert_allclose(np.asarray(xi_u), np.asarray(ref_xi_u), rtol=1e-4, atol=1e-4)
    np.testing.assert_allclose(np.asarray(xi), np.asarray(ref_xi), rtol=1e-4, atol=1e-3)
    np.testing.assert_allclose(np.asarray(y), np.asarray(ref_y), rtol=1e-4, atol=1e-4)
    assert bool(jnp.all((xi >= LOWER) & (xi <= UPPER)))
    print("KERNEL_OK")
</pallas_src>

<mosaic_0001>
module attributes {stable_mosaic.version = 11 : i64} {
  func.func @_epidemic_rollout_kernel(%arg0: memref<8x32xf32, #tpu.memory_space<vmem>>, %arg1: memref<64x32xf32, #tpu.memory_space<vmem>>, %arg2: memref<9x128xf32, #tpu.memory_space<vmem>>, %arg3: memref<8x8xf32, #tpu.memory_space<vmem>>) attributes {dimension_semantics = [], scalar_prefetch = 0 : i64, scratch_operands = 0 : i64, tpu.core_type = #tpu.core_type<tc>} {
    %c0 = arith.constant 0 : index
    %c0_0 = arith.constant 0 : index
    %0 = vector.load %arg0[%c0, %c0_0] : memref<8x32xf32, #tpu.memory_space<vmem>>, vector<8x32xf32>
    %1 = vector.extract_strided_slice %0 {offsets = [0, 0], sizes = [1, 32], strides = [1, 1]} : vector<8x32xf32> to vector<1x32xf32>
    %2 = vector.extract_strided_slice %0 {offsets = [1, 0], sizes = [1, 32], strides = [1, 1]} : vector<8x32xf32> to vector<1x32xf32>
    %3 = vector.extract_strided_slice %0 {offsets = [2, 0], sizes = [1, 32], strides = [1, 1]} : vector<8x32xf32> to vector<1x32xf32>
    %4 = vector.extract_strided_slice %0 {offsets = [3, 0], sizes = [1, 32], strides = [1, 1]} : vector<8x32xf32> to vector<1x32xf32>
    %5 = vector.extract_strided_slice %0 {offsets = [4, 0], sizes = [1, 32], strides = [1, 1]} : vector<8x32xf32> to vector<1x32xf32>
    %6 = vector.extract_strided_slice %0 {offsets = [5, 0], sizes = [1, 32], strides = [1, 1]} : vector<8x32xf32> to vector<1x32xf32>
    %7 = vector.extract_strided_slice %0 {offsets = [6, 0], sizes = [1, 1], strides = [1, 1]} : vector<8x32xf32> to vector<1x1xf32>
    %c0_1 = arith.constant 0 : index
    %c0_2 = arith.constant 0 : index
    %8 = vector.load %arg1[%c0_1, %c0_2] : memref<64x32xf32, #tpu.memory_space<vmem>>, vector<64x32xf32>
    %9 = vector.extract_strided_slice %8 {offsets = [0, 0], sizes = [32, 32], strides = [1, 1]} : vector<64x32xf32> to vector<32x32xf32>
    %10 = vector.extract_strided_slice %8 {offsets = [32, 0], sizes = [32, 32], strides = [1, 1]} : vector<64x32xf32> to vector<32x32xf32>
    %c0_3 = arith.constant 0 : index
    %c0_4 = arith.constant 0 : index
    %11 = vector.load %arg2[%c0_3, %c0_4] : memref<9x128xf32, #tpu.memory_space<vmem>>, vector<9x128xf32>
    %12 = vector.extract_strided_slice %11 {offsets = [0, 0], sizes = [1, 128], strides = [1, 1]} : vector<9x128xf32> to vector<1x128xf32>
    %13 = vector.extract_strided_slice %11 {offsets = [1, 0], sizes = [8, 128], strides = [1, 1]} : vector<9x128xf32> to vector<8x128xf32>
    %14 = tpu.iota {dimensions = array<i32: 1>} : vector<8x128xi32>
    %cst = arith.constant 0.000000e+00 : f32
    %15 = vector.broadcast %cst : f32 to vector<1x32xf32>
    %16 = arith.maximumf %1, %15 : vector<1x32xf32>
    %17 = arith.mulf %16, %2 : vector<1x32xf32>
    %cst_5 = arith.constant dense<0.000000e+00> : vector<1xf32>
    %18 = vector.multi_reduction <add>, %17, %cst_5 [1] : vector<1x32xf32> to vector<1xf32>
    %19 = vector.shape_cast %18 : vector<1xf32> to vector<1x1xf32>
    %20 = arith.addf %19, %7 : vector<1x1xf32>
    %21 = vector.shape_cast %20 : vector<1x1xf32> to vector<1x1xf32>
    %22 = vector.broadcast %21 : vector<1x1xf32> to vector<8x1xf32>
    %cst_6 = arith.constant 5.000000e-01 : f32
    %23 = vector.broadcast %cst_6 : f32 to vector<8x1xf32>
    %24 = arith.mulf %23, %22 : vector<8x1xf32>
    %25 = math.tanh %24 : vector<8x1xf32>
    %cst_7 = arith.constant 1.000000e+00 : f32
    %26 = vector.broadcast %cst_7 : f32 to vector<8x1xf32>
    %27 = arith.addf %25, %26 : vector<8x1xf32>
    %cst_8 = arith.constant 5.000000e-01 : f32
    %28 = vector.broadcast %cst_8 : f32 to vector<8x1xf32>
    %29 = arith.mulf %28, %27 : vector<8x1xf32>
    %cst_9 = arith.constant 9.998000e+01 : f32
    %30 = vector.broadcast %cst_9 : f32 to vector<8x1xf32>
    %31 = arith.mulf %29, %30 : vector<8x1xf32>
    %cst_10 = arith.constant 0.00999999977 : f32
    %32 = vector.broadcast %cst_10 : f32 to vector<8x1xf32>
    %33 = arith.addf %32, %31 : vector<8x1xf32>
    %34 = vector.broadcast %33 : vector<8x1xf32> to vector<8x128xf32>
    %35 = vector.broadcast %12 : vector<1x128xf32> to vector<8x128xf32>
    %36 = arith.subf %34, %35 : vector<8x128xf32>
    %37 = math.absf %36 : vector<8x128xf32>
    %cst_11 = arith.constant dense<0x7F800000> : vector<8xf32>
    %38 = vector.multi_reduction <minimumf>, %37, %cst_11 [1] : vector<8x128xf32> to vector<8xf32>
    %39 = vector.shape_cast %38 : vector<8xf32> to vector<8x1xf32>
    %40 = vector.broadcast %39 : vector<8x1xf32> to vector<8x128xf32>
    %41 = arith.cmpf oeq, %37, %40 : vector<8x128xf32>
    %c128_i32 = arith.constant 128 : i32
    %42 = vector.broadcast %c128_i32 : i32 to vector<8x128xi32>
    %43 = arith.select %41, %14, %42 : vector<8x128xi1>, vector<8x128xi32>
    %cst_12 = arith.constant dense<2147483647> : vector<8xi32>
    %44 = vector.multi_reduction <minsi>, %43, %cst_12 [1] : vector<8x128xi32> to vector<8xi32>
    %45 = vector.shape_cast %44 : vector<8xi32> to vector<8x1xi32>
    %46 = vector.broadcast %45 : vector<8x1xi32> to vector<8x128xi32>
    %47 = arith.cmpi eq, %43, %46 : vector<8x128xi32>
    %cst_13 = arith.constant 0.000000e+00 : f32
    %48 = vector.broadcast %cst_13 : f32 to vector<8x128xf32>
    %49 = arith.select %47, %13, %48 : vector<8x128xi1>, vector<8x128xf32>
    %cst_14 = arith.constant dense<0.000000e+00> : vector<8xf32>
    %50 = vector.multi_reduction <add>, %49, %cst_14 [1] : vector<8x128xf32> to vector<8xf32>
    %51 = vector.shape_cast %50 : vector<8xf32> to vector<8x1xf32>
    %52 = vector.broadcast %22 : vector<8x1xf32> to vector<8x32xf32>
    %53 = vector.broadcast %4 : vector<1x32xf32> to vector<8x32xf32>
    %54 = arith.mulf %52, %53 : vector<8x32xf32>
    %55 = vector.broadcast %51 : vector<8x1xf32> to vector<8x32xf32>
    %56 = vector.broadcast %5 : vector<1x32xf32> to vector<8x32xf32>
    %57 = arith.mulf %55, %56 : vector<8x32xf32>
    %58 = arith.addf %54, %57 : vector<8x32xf32>
    %59 = vector.broadcast %3 : vector<1x32xf32> to vector<8x32xf32>
    %60 = arith.addf %58, %59 : vector<8x32xf32>
    %cst_15 = arith.constant 0.000000e+00 : f32
    %61 = vector.broadcast %cst_15 : f32 to vector<8x32xf32>
    %62 = arith.maximumf %60, %61 : vector<8x32xf32>
    %cst_16 = arith.constant dense<0.000000e+00> : vector<8x32xf32>
    %63 = tpu.matmul %62, %10, %cst_16 {dimension_numbers = #tpu.dot_dimension_numbers<[1], [0], [0], [1], [0, 0, 1, 1], [], []>} : vector<8x32xf32>, vector<32x32xf32>, vector<8x32xf32> -> vector<8x32xf32>
    %64 = vector.broadcast %6 : vector<1x32xf32> to vector<8x32xf32>
    %65 = arith.addf %63, %64 : vector<8x32xf32>
    %cst_17 = arith.constant 0.000000e+00 : f32
    %66 = vector.broadcast %cst_17 : f32 to vector<8x32xf32>
    %67 = arith.maximumf %65, %66 : vector<8x32xf32>
    %cst_18 = arith.constant dense<0.000000e+00> : vector<8x32xf32>
    %68 = tpu.matmul %67, %9, %cst_18 {dimension_numbers = #tpu.dot_dimension_numbers<[1], [0], [0], [1], [0, 0, 1, 1], [], []>} : vector<8x32xf32>, vector<32x32xf32>, vector<8x32xf32> -> vector<8x32xf32>
    %69 = vector.broadcast %1 : vector<1x32xf32> to vector<8x32xf32>
    %70 = arith.addf %68, %69 : vector<8x32xf32>
    %cst_19 = arith.constant 0.000000e+00 : f32
    %71 = vector.broadcast %cst_19 : f32 to vector<8x32xf32>
    %72 = arith.maximumf %70, %71 : vector<8x32xf32>
    %73 = vector.broadcast %2 : vector<1x32xf32> to vector<8x32xf32>
    %74 = arith.mulf %72, %73 : vector<8x32xf32>
    %cst_20 = arith.constant dense<0.000000e+00> : vector<8xf32>
    %75 = vector.multi_reduction <add>, %74, %cst_20 [1] : vector<8x32xf32> to vector<8xf32>
    %76 = vector.shape_cast %75 : vector<8xf32> to vector<8x1xf32>
    %77 = vector.broadcast %7 : vector<1x1xf32> to vector<8x1xf32>
    %78 = arith.addf %76, %77 : vector<8x1xf32>
    %cst_21 = arith.constant 5.000000e-01 : f32
    %79 = vector.broadcast %cst_21 : f32 to vector<8x1xf32>
    %80 = arith.mulf %79, %78 : vector<8x1xf32>
    %81 = math.tanh %80 : vector<8x1xf32>
    %cst_22 = arith.constant 1.000000e+00 : f32
    %82 = vector.broadcast %cst_22 : f32 to vector<8x1xf32>
    %83 = arith.addf %81, %82 : vector<8x1xf32>
    %cst_23 = arith.constant 5.000000e-01 : f32
    %84 = vector.broadcast %cst_23 : f32 to vector<8x1xf32>
    %85 = arith.mulf %84, %83 : vector<8x1xf32>
    %cst_24 = arith.constant 9.998000e+01 : f32
    %86 = vector.broadcast %cst_24 : f32 to vector<8x1xf32>
    %87 = arith.mulf %85, %86 : vector<8x1xf32>
    %cst_25 = arith.constant 0.00999999977 : f32
    %88 = vector.broadcast %cst_25 : f32 to vector<8x1xf32>
    %89 = arith.addf %88, %87 : vector<8x1xf32>
    %90 = vector.broadcast %89 : vector<8x1xf32> to vector<8x128xf32>
    %91 = vector.broadcast %12 : vector<1x128xf32> to vector<8x128xf32>
    %92 = arith.subf %90, %91 : vector<8x128xf32>
    %93 = math.absf %92 : vector<8x128xf32>
    %cst_26 = arith.constant dense<0x7F800000> : vector<8xf32>
    %94 = vector.multi_reduction <minimumf>, %93, %cst_26 [1] : vector<8x128xf32> to vector<8xf32>
    %95 = vector.shape_cast %94 : vector<8xf32> to vector<8x1xf32>
    %96 = vector.broadcast %95 : vector<8x1xf32> to vector<8x128xf32>
    %97 = arith.cmpf oeq, %93, %96 : vector<8x128xf32>
    %c128_i32_27 = arith.constant 128 : i32
    %98 = vector.broadcast %c128_i32_27 : i32 to vector<8x128xi32>
    %99 = arith.select %97, %14, %98 : vector<8x128xi1>, vector<8x128xi32>
    %cst_28 = arith.constant dense<2147483647> : vector<8xi32>
    %100 = vector.multi_reduction <minsi>, %99, %cst_28 [1] : vector<8x128xi32> to vector<8xi32>
    %101 = vector.shape_cast %100 : vector<8xi32> to vector<8x1xi32>
    %102 = vector.broadcast %101 : vector<8x1xi32> to vector<8x128xi32>
    %103 = arith.cmpi eq, %99, %102 : vector<8x128xi32>
    %cst_29 = arith.constant 0.000000e+00 : f32
    %104 = vector.broadcast %cst_29 : f32 to vector<8x128xf32>
    %105 = arith.select %103, %13, %104 : vector<8x128xi1>, vector<8x128xf32>
    %cst_30 = arith.constant dense<0.000000e+00> : vector<8xf32>
    %106 = vector.multi_reduction <add>, %105, %cst_30 [1] : vector<8x128xf32> to vector<8xf32>
    %107 = vector.shape_cast %106 : vector<8xf32> to vector<8x1xf32>
    %108 = vector.broadcast %78 : vector<8x1xf32> to vector<8x32xf32>
    %109 = vector.broadcast %4 : vector<1x32xf32> to vector<8x32xf32>
    %110 = arith.mulf %108, %109 : vector<8x32xf32>
    %111 = vector.broadcast %107 : vector<8x1xf32> to vector<8x32xf32>
    %112 = vector.broadcast %5 : vector<1x32xf32> to vector<8x32xf32>
    %113 = arith.mulf %111, %112 : vector<8x32xf32>
    %114 = arith.addf %110, %113 : vector<8x32xf32>
    %115 = vector.broadcast %3 : vector<1x32xf32> to vector<8x32xf32>
    %116 = arith.addf %114, %115 : vector<8x32xf32>
    %cst_31 = arith.constant 0.000000e+00 : f32
    %117 = vector.broadcast %cst_31 : f32 to vector<8x32xf32>
    %118 = arith.maximumf %116, %117 : vector<8x32xf32>
    %cst_32 = arith.constant dense<0.000000e+00> : vector<8x32xf32>
    %119 = tpu.matmul %118, %10, %cst_32 {dimension_numbers = #tpu.dot_dimension_numbers<[1], [0], [0], [1], [0, 0, 1, 1], [], []>} : vector<8x32xf32>, vector<32x32xf32>, vector<8x32xf32> -> vector<8x32xf32>
    %120 = vector.broadcast %6 : vector<1x32xf32> to vector<8x32xf32>
    %121 = arith.addf %119, %120 : vector<8x32xf32>
    %cst_33 = arith.constant 0.000000e+00 : f32
    %122 = vector.broadcast %cst_33 : f32 to vector<8x32xf32>
    %123 = arith.maximumf %121, %122 : vector<8x32xf32>
    %124 = arith.addf %67, %123 : vector<8x32xf32>
    %cst_34 = arith.constant dense<0.000000e+00> : vector<8x32xf32>
    %125 = tpu.matmul %124, %9, %cst_34 {dimension_numbers = #tpu.dot_dimension_numbers<[1], [0], [0], [1], [0, 0, 1, 1], [], []>} : vector<8x32xf32>, vector<32x32xf32>, vector<8x32xf32> -> vector<8x32xf32>
    %126 = vector.broadcast %1 : vector<1x32xf32> to vector<8x32xf32>
    %127 = arith.addf %125, %126 : vector<8x32xf32>
    %cst_35 = arith.constant 0.000000e+00 : f32
    %128 = vector.broadcast %cst_35 : f32 to vector<8x32xf32>
    %129 = arith.maximumf %127, %128 : vector<8x32xf32>
    %130 = vector.broadcast %2 : vector<1x32xf32> to vector<8x32xf32>
    %131 = arith.mulf %129, %130 : vector<8x32xf32>
    %cst_36 = arith.constant dense<0.000000e+00> : vector<8xf32>
    %132 = vector.multi_reduction <add>, %131, %cst_36 [1] : vector<8x32xf32> to vector<8xf32>
    %133 = vector.shape_cast %132 : vector<8xf32> to vector<8x1xf32>
    %134 = vector.broadcast %7 : vector<1x1xf32> to vector<8x1xf32>
    %135 = arith.addf %133, %134 : vector<8x1xf32>
    %cst_37 = arith.constant 5.000000e-01 : f32
    %136 = vector.broadcast %cst_37 : f32 to vector<8x1xf32>
    %137 = arith.mulf %136, %135 : vector<8x1xf32>
    %138 = math.tanh %137 : vector<8x1xf32>
    %cst_38 = arith.constant 1.000000e+00 : f32
    %139 = vector.broadcast %cst_38 : f32 to vector<8x1xf32>
    %140 = arith.addf %138, %139 : vector<8x1xf32>
    %cst_39 = arith.constant 5.000000e-01 : f32
    %141 = vector.broadcast %cst_39 : f32 to vector<8x1xf32>
    %142 = arith.mulf %141, %140 : vector<8x1xf32>
    %cst_40 = arith.constant 9.998000e+01 : f32
    %143 = vector.broadcast %cst_40 : f32 to vector<8x1xf32>
    %144 = arith.mulf %142, %143 : vector<8x1xf32>
    %cst_41 = arith.constant 0.00999999977 : f32
    %145 = vector.broadcast %cst_41 : f32 to vector<8x1xf32>
    %146 = arith.addf %145, %144 : vector<8x1xf32>
    %147 = vector.broadcast %146 : vector<8x1xf32> to vector<8x128xf32>
    %148 = vector.broadcast %12 : vector<1x128xf32> to vector<8x128xf32>
    %149 = arith.subf %147, %148 : vector<8x128xf32>
    %150 = math.absf %149 : vector<8x128xf32>
    %cst_42 = arith.constant dense<0x7F800000> : vector<8xf32>
    %151 = vector.multi_reduction <minimumf>, %150, %cst_42 [1] : vector<8x128xf32> to vector<8xf32>
    %152 = vector.shape_cast %151 : vector<8xf32> to vector<8x1xf32>
    %153 = vector.broadcast %152 : vector<8x1xf32> to vector<8x128xf32>
    %154 = arith.cmpf oeq, %150, %153 : vector<8x128xf32>
    %c128_i32_43 = arith.constant 128 : i32
    %155 = vector.broadcast %c128_i32_43 : i32 to vector<8x128xi32>
    %156 = arith.select %154, %14, %155 : vector<8x128xi1>, vector<8x128xi32>
    %cst_44 = arith.constant dense<2147483647> : vector<8xi32>
    %157 = vector.multi_reduction <minsi>, %156, %cst_44 [1] : vector<8x128xi32> to vector<8xi32>
    %158 = vector.shape_cast %157 : vector<8xi32> to vector<8x1xi32>
    %159 = vector.broadcast %158 : vector<8x1xi32> to vector<8x128xi32>
    %160 = arith.cmpi eq, %156, %159 : vector<8x128xi32>
    %cst_45 = arith.constant 0.000000e+00 : f32
    %161 = vector.broadcast %cst_45 : f32 to vector<8x128xf32>
    %162 = arith.select %160, %13, %161 : vector<8x128xi1>, vector<8x128xf32>
    %cst_46 = arith.constant dense<0.000000e+00> : vector<8xf32>
    %163 = vector.multi_reduction <add>, %162, %cst_46 [1] : vector<8x128xf32> to vector<8xf32>
    %164 = vector.shape_cast %163 : vector<8xf32> to vector<8x1xf32>
    %165 = vector.broadcast %135 : vector<8x1xf32> to vector<8x32xf32>
    %166 = vector.broadcast %4 : vector<1x32xf32> to vector<8x32xf32>
    %167 = arith.mulf %165, %166 : vector<8x32xf32>
    %168 = vector.broadcast %164 : vector<8x1xf32> to vector<8x32xf32>
    %169 = vector.broadcast %5 : vector<1x32xf32> to vector<8x32xf32>
    %170 = arith.mulf %168, %169 : vector<8x32xf32>
    %171 = arith.addf %167, %170 : vector<8x32xf32>
    %172 = vector.broadcast %3 : vector<1x32xf32> to vector<8x32xf32>
    %173 = arith.addf %171, %172 : vector<8x32xf32>
    %cst_47 = arith.constant 0.000000e+00 : f32
    %174 = vector.broadcast %cst_47 : f32 to vector<8x32xf32>
    %175 = arith.maximumf %173, %174 : vector<8x32xf32>
    %cst_48 = arith.constant dense<0.000000e+00> : vector<8x32xf32>
    %176 = tpu.matmul %175, %10, %cst_48 {dimension_numbers = #tpu.dot_dimension_numbers<[1], [0], [0], [1], [0, 0, 1, 1], [], []>} : vector<8x32xf32>, vector<32x32xf32>, vector<8x32xf32> -> vector<8x32xf32>
    %177 = vector.broadcast %6 : vector<1x32xf32> to vector<8x32xf32>
    %178 = arith.addf %176, %177 : vector<8x32xf32>
    %cst_49 = arith.constant 0.000000e+00 : f32
    %179 = vector.broadcast %cst_49 : f32 to vector<8x32xf32>
    %180 = arith.maximumf %178, %179 : vector<8x32xf32>
    %181 = arith.addf %124, %180 : vector<8x32xf32>
    %cst_50 = arith.constant dense<0.000000e+00> : vector<8x32xf32>
    %182 = tpu.matmul %181, %9, %cst_50 {dimension_numbers = #tpu.dot_dimension_numbers<[1], [0], [0], [1], [0, 0, 1, 1], [], []>} : vector<8x32xf32>, vector<32x32xf32>, vector<8x32xf32> -> vector<8x32xf32>
    %183 = vector.broadcast %1 : vector<1x32xf32> to vector<8x32xf32>
    %184 = arith.addf %182, %183 : vector<8x32xf32>
    %cst_51 = arith.constant 0.000000e+00 : f32
    %185 = vector.broadcast %cst_51 : f32 to vector<8x32xf32>
    %186 = arith.maximumf %184, %185 : vector<8x32xf32>
    %187 = vector.broadcast %2 : vector<1x32xf32> to vector<8x32xf32>
    %188 = arith.mulf %186, %187 : vector<8x32xf32>
    %cst_52 = arith.constant dense<0.000000e+00> : vector<8xf32>
    %189 = vector.multi_reduction <add>, %188, %cst_52 [1] : vector<8x32xf32> to vector<8xf32>
    %190 = vector.shape_cast %189 : vector<8xf32> to vector<8x1xf32>
    %191 = vector.broadcast %7 : vector<1x1xf32> to vector<8x1xf32>
    %192 = arith.addf %190, %191 : vector<8x1xf32>
    %cst_53 = arith.constant 5.000000e-01 : f32
    %193 = vector.broadcast %cst_53 : f32 to vector<8x1xf32>
    %194 = arith.mulf %193, %192 : vector<8x1xf32>
    %195 = math.tanh %194 : vector<8x1xf32>
    %cst_54 = arith.constant 1.000000e+00 : f32
    %196 = vector.broadcast %cst_54 : f32 to vector<8x1xf32>
    %197 = arith.addf %195, %196 : vector<8x1xf32>
    %cst_55 = arith.constant 5.000000e-01 : f32
    %198 = vector.broadcast %cst_55 : f32 to vector<8x1xf32>
    %199 = arith.mulf %198, %197 : vector<8x1xf32>
    %cst_56 = arith.constant 9.998000e+01 : f32
    %200 = vector.broadcast %cst_56 : f32 to vector<8x1xf32>
    %201 = arith.mulf %199, %200 : vector<8x1xf32>
    %cst_57 = arith.constant 0.00999999977 : f32
    %202 = vector.broadcast %cst_57 : f32 to vector<8x1xf32>
    %203 = arith.addf %202, %201 : vector<8x1xf32>
    %204 = vector.broadcast %203 : vector<8x1xf32> to vector<8x128xf32>
    %205 = vector.broadcast %12 : vector<1x128xf32> to vector<8x128xf32>
    %206 = arith.subf %204, %205 : vector<8x128xf32>
    %207 = math.absf %206 : vector<8x128xf32>
    %cst_58 = arith.constant dense<0x7F800000> : vector<8xf32>
    %208 = vector.multi_reduction <minimumf>, %207, %cst_58 [1] : vector<8x128xf32> to vector<8xf32>
    %209 = vector.shape_cast %208 : vector<8xf32> to vector<8x1xf32>
    %210 = vector.broadcast %209 : vector<8x1xf32> to vector<8x128xf32>
    %211 = arith.cmpf oeq, %207, %210 : vector<8x128xf32>
    %c128_i32_59 = arith.constant 128 : i32
    %212 = vector.broadcast %c128_i32_59 : i32 to vector<8x128xi32>
    %213 = arith.select %211, %14, %212 : vector<8x128xi1>, vector<8x128xi32>
    %cst_60 = arith.constant dense<2147483647> : vector<8xi32>
    %214 = vector.multi_reduction <minsi>, %213, %cst_60 [1] : vector<8x128xi32> to vector<8xi32>
    %215 = vector.shape_cast %214 : vector<8xi32> to vector<8x1xi32>
    %216 = vector.broadcast %215 : vector<8x1xi32> to vector<8x128xi32>
    %217 = arith.cmpi eq, %213, %216 : vector<8x128xi32>
    %cst_61 = arith.constant 0.000000e+00 : f32
    %218 = vector.broadcast %cst_61 : f32 to vector<8x128xf32>
    %219 = arith.select %217, %13, %218 : vector<8x128xi1>, vector<8x128xf32>
    %cst_62 = arith.constant dense<0.000000e+00> : vector<8xf32>
    %220 = vector.multi_reduction <add>, %219, %cst_62 [1] : vector<8x128xf32> to vector<8xf32>
    %221 = vector.shape_cast %220 : vector<8xf32> to vector<8x1xf32>
    %222 = tpu.concatenate %22, %78, %135, %192, %51, %107, %164, %221 in 1 : vector<8x1xf32>, vector<8x1xf32>, vector<8x1xf32>, vector<8x1xf32>, vector<8x1xf32>, vector<8x1xf32>, vector<8x1xf32>, vector<8x1xf32> -> vector<8x8xf32>
    %c0_63 = arith.constant 0 : index
    %c0_64 = arith.constant 0 : index
    %223 = vector.load %arg3[%c0_63, %c0_64] : memref<8x8xf32, #tpu.memory_space<vmem>>, vector<8x8xf32>
    tpu.vector_store %arg3[%c0_63, %c0_64], %222 {strides = array<i32>} : memref<8x8xf32, #tpu.memory_space<vmem>>, vector<8x8xf32>,
    return
  }
}

</mosaic_0001>

<bundles_post_ra>
// kernel: epidemic_forward.1
= control target key start
LH: loop header
LB: loop body
LE: loop exit
PB: predicated region body
PF: predicated region fallthrough
CT: control target
= control target key end

     0   :  { %vm32_vm0 = vcmask 253952   ;;  %v460_v5 = vmov 0   ;;  %v25_v21 = vlaneseq  ;;  %vm79_vm3 = vcmask 1040384   ;;  %s462_s6 = smov 3   ;;  %s463_s7 = smov 2   ;;  %s641_s0 = inlined_call_operand.vmem [shape: f32[8,32], index: 0, kind: input, shape index: {}]   ;;  %s642_s2 = inlined_call_operand.vmem [shape: f32[9,128], index: 2, kind: input, shape index: {}]   ;;  %s643_s1 = inlined_call_operand.vmem [shape: f32[64,32], index: 1, kind: input, shape index: {}]   ;;  %s644_s3 = inlined_call_operand.vmem [shape: f32[8,8], index: 3, kind: output, shape index: {}]  }
   0x1   :  { %v487_v0 = vld [vmem:[%s641_s0] sm:$0xff]  ;;  %449 = vset.pattern.permute.xlu0 %v460_v5  ;;  %450 = vset.pattern.permute.xlu1 %v460_v5  ;;  %v513_v36 = vld [vmem:[%s642_s2 + $0x8] sm:$0x1]  ;;  %vm75_vm4 = vcmask 1047553   ;;  %v22_v41 = vld [vmem:[%s643_s1 + $0x38] sm:$0xff]  ;;  %vm106_vm6 = vcmask 261120  }
   0x2   :  { %v27_v1 = vmax.f32 %v487_v0, 0.0  ;;  %v29_v2 = vrot.slane %v487_v0, 1  ;;  %451 = vset.pattern.permute.xlu2 %v460_v5  ;;  %v36_v6 = vrot.slane %v487_v0, 6  ;;  %v501_v16 = vld [vmem:[%s642_s2] sm:$0xff]  ;;  %v507_v22 = vand.u32 127, %v25_v21  ;;  %121 = vmatpush.msra.mxu0 %v22_v41  ;;  %v21_v42 = vld [vmem:[%s643_s1 + $0x30] sm:$0xff] }
   0x3   :  { %v504_v17 = vperm.slane %v501_v16, 0  ;;  %228 = vmatpush.msra.mxu2 %v22_v41  ;;  %v20_v43 = vld [vmem:[%s643_s1 + $0x28] sm:$0xff]  ;;  %v19_v44 = vld [vmem:[%s643_s1 + $0x20] sm:$0xff]  ;;  %v18_v45 = vld [vmem:[%s643_s1 + $0x18] sm:$0xff]  ;;  %v533_v46 = vperm.slane %v487_v0, 3  ;;  %v536_v47 = vperm.slane %v487_v0, 4 }
   0x4   :  { %v31_v3 = vmul.f32 %v29_v2, %v27_v1  ;;  %122 = vmatpush.msra.mxu0 %v21_v42  ;;  %146 = vmatpush.msra.mxu1 %v18_v45  ;;  %v544_v52 = vperm.slane %v487_v0, 2  ;;  %vm102_vm7 = vcmask 1046528   ;;  %v17_v1 = vld [vmem:[%s643_s1 + $0x10] sm:$0xff]  ;;  %v16_v2 = vld [vmem:[%s643_s1 + $0x8] sm:$0xff] }
   0x5   :  { %229 = vmatpush.msra.mxu2 %v21_v42  ;;  %253 = vmatpush.msra.mxu3 %v18_v45 }
   0x6   :  { %v33_v4 = vsel %vm32_vm0, %v31_v3, 0.0  ;;  %123 = vmatpush.msra.mxu0 %v20_v43  ;;  %147 = vmatpush.msra.mxu1 %v17_v1  ;;  %v15_v3 = vld [vmem:[%s643_s1] sm:$0xff]  ;;  %s461_s1 = smov 1  }
   0x7   :  { %34 = vadd.xlane.f32.xlu0 %v33_v4  ;;  %230 = vmatpush.msra.mxu2 %v20_v43  ;;  %v564_v4 = vperm.slane %v487_v0, 5 }
   0x8   :  { %124 = vmatpush.msra.mxu0 %v19_v44  ;;  %254 = vmatpush.msra.mxu3 %v17_v1 }
   0x9   :  { %231 = vmatpush.msra.mxu2 %v19_v44  ;;  %148 = vmatpush.msra.mxu1 %v16_v2 }
   0xa   :  { %327 = vmatpush.msrb.mxu0 %v22_v41  ;;  %255 = vmatpush.msra.mxu3 %v16_v2  ;;  %v197_v41 = vrot.slane %v513_v36, 1 }
   0xb   :  { %149 = vmatpush.msra.mxu1 %v15_v3 }
   0xc   :  { %328 = vmatpush.msrb.mxu0 %v21_v42  ;;  %256 = vmatpush.msra.mxu3 %v15_v3  ;;  %v196_v42 = vrot.slane %v501_v16, 1 }
   0xd   :  { %352 = vmatpush.msrb.mxu1 %v18_v45 }
   0xe   :  { %329 = vmatpush.msrb.mxu0 %v20_v43 }
   0xf   :  { %353 = vmatpush.msrb.mxu1 %v17_v1 }
  0x10   :  { %330 = vmatpush.msrb.mxu0 %v19_v44 }
  0x11   :  { %354 = vmatpush.msrb.mxu1 %v16_v2 }
  0x13   :  { %355 = vmatpush.msrb.mxu1 %v15_v3 }
  0x7a   :  { %v35_v7 = vpop.xlane.xlu0 %34 }
  0x7b   :  { %v492_v8 = vadd.f32 %v36_v6, %v35_v7 }
  0x7d   :  { %v39_v9 = vperm.slane %v492_v8, 0  ;;  %443 = vpush %v492_v8 }
  0x7f   :  { %v40_v10 = vmul.f32 0.5, %v39_v9 }
  0x81   :  { %452 = vtanh.f32 %v40_v10  ;;  %v569_v10 = vperm.slane %v487_v0, 0 }
  0x87   :  { %v453_v11 = vpop.eup %452 }
  0x88   :  { %v42_v12 = vadd.f32 1.0, %v453_v11 }
  0x8a   :  { %v43_v13 = vmul.f32 0.5, %v42_v12 }
  0x8c   :  { %v44_v14 = vmul.f32 99.98, %v43_v13  ;;  %v573_v13 = vperm.slane %v487_v0, 1 }
  0x8e   :  { %v45_v15 = vadd.f32 0.01, %v44_v14 }
  0x90   :  { %48 = vperm.xlu0 %449, %v45_v15  }
  0xae   :  { %s444_s26 = spop %443 }
  0xaf   :  { %v85_v48 = vstv %s444_s26 }
  0xb0   :  { %v88_v51 = vmul.f32 %v533_v46, %v85_v48 }
 0x102   :  { %v49_v18 = vpop.permute.xlu0 %48 }
 0x103   :  { %v52_v19 = vsub.f32 %v49_v18, %v504_v17 }
 0x105   :  { %v53_v20 = vand.u32 2147483647, %v52_v19  ;;  %v578_v19 = vperm.slane %v487_v0, 6 }
 0x107   :  { %54 = vmin.xlane.f32.xlu1 %v53_v20 }
 0x17a   :  { %v55_v23 = vpop.xlane.xlu1 %54 }
 0x17b   :  { %vm56_vm1 = vcmp.eq.f32.partialorder %v53_v20, %v55_v23 }
 0x17c   :  { %v57_v24 = vsel %vm56_vm1, %v507_v22, 128  ;;  %vm417_vm1 = vcmask 7168  }
 0x17d   :  { %v59_v25 = vshra.s32 %v57_v24, 16  ;;  %v58_v27 = vand.u32 65535, %v57_v24 }
 0x17f   :  { %v61_v26 = vcvt.s32.f32 %v59_v25  ;;  %v60_v29 = vcvt.s32.f32 %v58_v27 }
 0x181   :  { %62 = vmin.xlane.f32.xlu1 %v61_v26 }
 0x1f4   :  { %v63_v28 = vpop.xlane.xlu1 %62 }
 0x1f5   :  { %vm64_vm2 = vcmp.eq.f32.partialorder %v61_v26, %v63_v28  ;;  %v69_v31 = vcvt.f32.s32 %v63_v28 }
 0x1f6   :  { %v65_v30 = vsel %vm64_vm2, %v60_v29, inf  ;;  %vm419_vm2 = vcmask 15360  }
 0x1f7   :  { %66 = vmin.xlane.f32.xlu2 %v65_v30  ;;  %v70_v33 = vshll.u32 %v69_v31, 16 }
 0x26a   :  { %v67_v32 = vpop.xlane.xlu2 %66 }
 0x26b   :  { %v68_v34 = vcvt.f32.s32 %v67_v32 }
 0x26d   :  { %v71_v35 = vadd.s32 %v70_v33, %v68_v34 }
 0x26f   :  { %vm72_vm5 = vcmp.eq.s32.totalorder %v57_v24, %v71_v35 }
 0x270   :  { %v74_v37 = vsel %vm72_vm5, %v513_v36, 0.0  ;;  %v73_v38 = vsel %vm72_vm5, %v501_v16, 0.0  ;;  %vm425_vm5 = vcmask 39936  }
 0x271   :  { %v80_v39 = vsel %vm79_vm3, %v74_v37, 0.0  ;;  %v76_v40 = vsel %vm75_vm4, %v73_v38, 0.0  ;;  %vm421_vm3 = vcmask 23552   ;;  %vm423_vm4 = vcmask 31744  }
 0x272   :  { %81 = vadd.xlane.f32.xlu1 %v80_v39  ;;  %77 = vadd.xlane.f32.xlu2 %v76_v40 }
 0x2e5   :  { %v538_v49 = vpop.xlane.xlu1 %81  ;;  %v540_v50 = vpop.xlane.xlu2 %77 }
 0x2e6   :  { %v91_v53 = vmul.f32 %v536_v47, %v538_v49  ;;  %v90_v54 = vmul.f32 %v536_v47, %v540_v50 }
 0x2e8   :  { %v93_v55 = vadd.f32 %v91_v53, %v88_v51  ;;  %v92_v56 = vadd.f32 %v90_v54, %v88_v51  ;;  %v590_v51 = vsel %vm102_vm7, %v196_v42, %v197_v41 }
 0x2ea   :  { %v96_v57 = vadd.f32 %v544_v52, %v93_v55  ;;  %v95_v58 = vadd.f32 %v544_v52, %v92_v56 }
 0x2ec   :  { %v98_v59 = vmax.f32 %v96_v57, 0.0  ;;  %v97_v60 = vmax.f32 %v95_v58, 0.0 }
 0x2ee   :  { %v103_v61 = vrot.slane %v97_v60, 1  ;;  %v104_v62 = vrot.slane %v98_v59, 1 }
 0x2f0   :  { %v105_v63 = vsel %vm102_vm7, %v103_v61, %v104_v62 }
 0x2f1   :  { %437 = vmatmul.msk.f32.vlgmr.msra.gmra.mxu0 %vm106_vm6, %v105_v63 }
 0x36e   :  { %v126_v5 = vpop.f32.mrf.mxu0 }
 0x36f   :  { %v127_v6 = vadd.f32 %v126_v5, %v564_v4 }
 0x371   :  { %v129_v7 = vmax.f32 %v127_v6, 0.0 }
 0x373   :  { %438 = vmatmul.msk.f32.vlgmr.msra.gmra.mxu1 %vm106_vm6, %v129_v7 }
 0x3f0   :  { %v151_v11 = vpop.f32.mrf.mxu1 }
 0x3f1   :  { %v152_v12 = vadd.f32 %v151_v11, %v569_v10 }
 0x3f3   :  { %v154_v14 = vmax.f32 %v152_v12, 0.0 }
 0x3f5   :  { %v156_v15 = vmul.f32 %v573_v13, %v154_v14 }
 0x3f7   :  { %v157_v18 = vsel %vm106_vm6, %v156_v15, 0.0 }
 0x3f8   :  { %158 = vadd.xlane.f32.xlu2 %v157_v18 }
 0x46b   :  { %v159_v20 = vpop.xlane.xlu2 %158 }
 0x46c   :  { %v581_v21 = vadd.f32 %v578_v19, %v159_v20 }
 0x46e   :  { %v162_v23 = vmul.f32 0.5, %v581_v21 }
 0x470   :  { %454 = vtanh.f32 %v162_v23 }
 0x476   :  { %v455_v24 = vpop.eup %454 }
 0x477   :  { %v164_v25 = vadd.f32 1.0, %v455_v24 }
 0x479   :  { %v165_v26 = vmul.f32 0.5, %v164_v25 }
 0x47b   :  { %v166_v27 = vmul.f32 99.98, %v165_v26 }
 0x47d   :  { %v167_v28 = vadd.f32 0.01, %v166_v27 }
 0x47f   :  { %170 = vperm.xlu1 %450, %v167_v28  }
 0x4f1   :  { %v171_v29 = vpop.permute.xlu1 %170 }
 0x4f2   :  { %v173_v30 = vsub.f32 %v171_v29, %v504_v17 }
 0x4f4   :  { %v174_v31 = vand.u32 2147483647, %v173_v30 }
 0x4f6   :  { %175 = vmin.xlane.f32.xlu2 %v174_v31 }
 0x569   :  { %v176_v0 = vpop.xlane.xlu2 %175 }
 0x56a   :  { %vm177_vm8 = vcmp.eq.f32.partialorder %v174_v31, %v176_v0 }
 0x56b   :  { %v178_v32 = vsel %vm177_vm8, %v507_v22, 128  ;;  %vm429_vm8 = vcmask 56320  }
 0x56c   :  { %v180_v33 = vshra.s32 %v178_v32, 16  ;;  %v179_v35 = vand.u32 65535, %v178_v32 }
 0x56e   :  { %v182_v34 = vcvt.s32.f32 %v180_v33  ;;  %v181_v38 = vcvt.s32.f32 %v179_v35 }
 0x570   :  { %183 = vmin.xlane.f32.xlu2 %v182_v34 }
 0x5e3   :  { %v184_v37 = vpop.xlane.xlu2 %183 }
 0x5e4   :  { %vm185_vm9 = vcmp.eq.f32.partialorder %v182_v34, %v184_v37  ;;  %v190_v40 = vcvt.f32.s32 %v184_v37 }
 0x5e5   :  { %v186_v39 = vsel %vm185_vm9, %v181_v38, inf  ;;  %vm431_vm9 = vcmask 64512  }
 0x5e6   :  { %187 = vmin.xlane.f32.xlu2 %v186_v39  ;;  %v191_v44 = vshll.u32 %v190_v40, 16 }
 0x5fe   :  { %205 = vperm.xlu2 %451, %v581_v21  }
 0x659   :  { %v188_v43 = vpop.xlane.xlu2 %187 }
 0x65a   :  { %v189_v45 = vcvt.f32.s32 %v188_v43 }
 0x65c   :  { %v192_v48 = vadd.s32 %v191_v44, %v189_v45 }
 0x65e   :  { %vm193_vm10 = vcmp.eq.s32.totalorder %v178_v32, %v192_v48 }
 0x65f   :  { %v200_v53 = vsel %vm193_vm10, %v590_v51, 0.0 }
 0x660   :  { %201 = vadd.xlane.f32.xlu0 %v200_v53 }
 0x661   :  { %v206_v54 = vpop.permute.xlu2 %205 }
 0x662   :  { %v208_v56 = vmul.f32 %v206_v54, %v533_v46 }
 0x6d3   :  { %v593_v55 = vpop.xlane.xlu0 %201 }
 0x6d4   :  { %v209_v36 = vmul.f32 %v593_v55, %v536_v47 }
 0x6d6   :  { %v210_v16 = vadd.f32 %v209_v36, %v208_v56 }
 0x6d8   :  { %v211_v57 = vadd.f32 %v210_v16, %v544_v52 }
 0x6da   :  { %v212_v58 = vmax.f32 %v211_v57, 0.0 }
 0x6dc   :  { %439 = vmatmul.msk.f32.vlgmr.msra.gmra.mxu2 %vm106_vm6, %v212_v58 }
 0x75f   :  { %v233_v59 = vpop.f32.mrf.mxu2 }
 0x760   :  { %v234_v60 = vadd.f32 %v233_v59, %v564_v4 }
 0x762   :  { %v236_v61 = vmax.f32 %v234_v60, 0.0 }
 0x764   :  { %v237_v62 = vadd.f32 %v236_v61, %v129_v7 }
 0x766   :  { %440 = vmatmul.msk.f32.vlgmr.msra.gmra.mxu3 %vm106_vm6, %v237_v62 }
 0x7e9   :  { %v258_v63 = vpop.f32.mrf.mxu3 }
 0x7ea   :  { %v259_v1 = vadd.f32 %v258_v63, %v569_v10 }
 0x7ec   :  { %v261_v2 = vmax.f32 %v259_v1, 0.0 }
 0x7ee   :  { %v262_v3 = vmul.f32 %v261_v2, %v573_v13 }
 0x7f0   :  { %v263_v5 = vsel %vm106_vm6, %v262_v3, 0.0 }
 0x7f1   :  { %264 = vadd.xlane.f32.xlu1 %v263_v5 }
 0x864   :  { %v265_v6 = vpop.xlane.xlu1 %264 }
 0x865   :  { %v606_v11 = vadd.f32 %v265_v6, %v578_v19 }
 0x867   :  { %v267_v12 = vmul.f32 0.5, %v606_v11 }
 0x869   :  { %456 = vtanh.f32 %v267_v12 }
 0x86f   :  { %v457_v14 = vpop.eup %456 }
 0x870   :  { %v269_v7 = vadd.f32 1.0, %v457_v14 }
 0x872   :  { %v270_v15 = vmul.f32 0.5, %v269_v7 }
 0x874   :  { %v271_v18 = vmul.f32 99.98, %v270_v15 }
 0x876   :  { %v272_v20 = vadd.f32 0.01, %v271_v18 }
 0x878   :  { %275 = vperm.xlu2 %451, %v272_v20  }
 0x8d2   :  { %v276_v23 = vpop.permute.xlu2 %275 }
 0x8d3   :  { %v278_v24 = vsub.f32 %v276_v23, %v504_v17 }
 0x8d5   :  { %v279_v25 = vand.u32 2147483647, %v278_v24 }
 0x8d7   :  { %280 = vmin.xlane.f32.xlu2 %v279_v25 }
 0x94a   :  { %v281_v26 = vpop.xlane.xlu2 %280 }
 0x94b   :  { %vm282_vm11 = vcmp.eq.f32.partialorder %v279_v25, %v281_v26 }
 0x94c   :  { %v283_v27 = vsel %vm282_vm11, %v507_v22, 128 }
 0x94d   :  { %v285_v28 = vshra.s32 %v283_v27, 16  ;;  %v284_v30 = vand.u32 65535, %v283_v27 }
 0x94f   :  { %v287_v29 = vcvt.s32.f32 %v285_v28  ;;  %v286_v0 = vcvt.s32.f32 %v284_v30  ;;  %v413_v28 = vrot.slane %v540_v50, 1 }
 0x951   :  { %288 = vmin.xlane.f32.xlu0 %v287_v29 }
 0x9c4   :  { %v289_v31 = vpop.xlane.xlu0 %288 }
 0x9c5   :  { %vm290_vm12 = vcmp.eq.f32.partialorder %v287_v29, %v289_v31  ;;  %v295_v33 = vcvt.f32.s32 %v289_v31 }
 0x9c6   :  { %v291_v32 = vsel %vm290_vm12, %v286_v0, inf }
 0x9c7   :  { %292 = vmin.xlane.f32.xlu1 %v291_v32  ;;  %v296_v35 = vshll.u32 %v295_v33, 16 }
 0x9e0   :  { %304 = vperm.xlu1 %450, %v606_v11  }
 0xa3a   :  { %v293_v34 = vpop.xlane.xlu1 %292 }
 0xa3b   :  { %v294_v37 = vcvt.f32.s32 %v293_v34 }
 0xa3d   :  { %v297_v38 = vadd.s32 %v296_v35, %v294_v37 }
 0xa3f   :  { %vm298_vm13 = vcmp.eq.s32.totalorder %v283_v27, %v297_v38 }
 0xa40   :  { %v299_v39 = vsel %vm298_vm13, %v590_v51, 0.0 }
 0xa41   :  { %300 = vadd.xlane.f32.xlu0 %v299_v39 }
 0xa52   :  { %v305_v40 = vpop.permute.xlu1 %304 }
 0xa53   :  { %v307_v42 = vmul.f32 %v305_v40, %v533_v46 }
 0xab4   :  { %v613_v41 = vpop.xlane.xlu0 %300 }
 0xab5   :  { %v308_v43 = vmul.f32 %v613_v41, %v536_v47 }
 0xab7   :  { %v309_v44 = vadd.f32 %v308_v43, %v307_v42 }
 0xab9   :  { %v310_v45 = vadd.f32 %v309_v44, %v544_v52 }
 0xabb   :  { %v311_v48 = vmax.f32 %v310_v45, 0.0 }
 0xabd   :  { %441 = vmatmul.msk.f32.vlgmr.msrb.gmra.mxu0 %vm106_vm6, %v311_v48 }
 0xb3a   :  { %v332_v53 = vpop.f32.mrf.mxu0 }
 0xb3b   :  { %v333_v54 = vadd.f32 %v332_v53, %v564_v4 }
 0xb3d   :  { %v335_v56 = vmax.f32 %v333_v54, 0.0 }
 0xb3f   :  { %v336_v36 = vadd.f32 %v335_v56, %v237_v62 }
 0xb41   :  { %442 = vmatmul.msk.f32.vlgmr.msrb.gmra.mxu1 %vm106_vm6, %v336_v36 }
 0xbbe   :  { %v357_v16 = vpop.f32.mrf.mxu1 }
 0xbbf   :  { %v358_v57 = vadd.f32 %v357_v16, %v569_v10 }
 0xbc1   :  { %v360_v46 = vmax.f32 %v358_v57, 0.0 }
 0xbc3   :  { %v361_v58 = vmul.f32 %v360_v46, %v573_v13 }
 0xbc5   :  { %v362_v47 = vsel %vm106_vm6, %v361_v58, 0.0  ;;  %vm427_vm6 = vcmask 48128  }
 0xbc6   :  { %363 = vadd.xlane.f32.xlu0 %v362_v47 }
 0xc39   :  { %v364_v52 = vpop.xlane.xlu0 %363 }
 0xc3a   :  { %v365_v59 = vadd.f32 %v364_v52, %v578_v19 }
 0xc3c   :  { %v366_v60 = vmul.f32 0.5, %v365_v59 }
 0xc3e   :  { %458 = vtanh.f32 %v366_v60 }
 0xc44   :  { %v459_v61 = vpop.eup %458 }
 0xc45   :  { %v368_v4 = vadd.f32 1.0, %v459_v61 }
 0xc47   :  { %v369_v63 = vmul.f32 0.5, %v368_v4 }
 0xc49   :  { %v370_v62 = vmul.f32 99.98, %v369_v63 }
 0xc4b   :  { %v371_v1 = vadd.f32 0.01, %v370_v62 }
 0xc4d   :  { %374 = vperm.xlu0 %449, %v371_v1  }
 0xc55   :  { %401 = vrot.lane.b32.xlu0 %v581_v21, %s461_s1 }
 0xc5d   :  { %408 = vrot.lane.b32.xlu0 %v365_v59, %s462_s6 }
 0xcbf   :  { %v375_v10 = vpop.permute.xlu0 %374 }
 0xcc0   :  { %v377_v13 = vsub.f32 %v375_v10, %v504_v17 }
 0xcc2   :  { %v378_v2 = vand.u32 2147483647, %v377_v13 }
 0xcc4   :  { %379 = vmin.xlane.f32.xlu2 %v378_v2 }
 0xcc7   :  { %v402_v24 = vpop.permute.xlu0 %401 }
 0xcc8   :  { %v418_v26 = vsel %vm417_vm1, %v39_v9, %v402_v24 }
 0xccf   :  { %v409_v29 = vpop.permute.xlu0 %408 }
 0xd37   :  { %v380_v3 = vpop.xlane.xlu2 %379 }
 0xd38   :  { %vm381_vm14 = vcmp.eq.f32.partialorder %v378_v2, %v380_v3 }
 0xd39   :  { %v382_v19 = vsel %vm381_vm14, %v507_v22, 128 }
 0xd3a   :  { %v384_v5 = vshra.s32 %v382_v19, 16  ;;  %v383_v12 = vand.u32 65535, %v382_v19 }
 0xd3c   :  { %v386_v6 = vcvt.s32.f32 %v384_v5  ;;  %v385_v7 = vcvt.s32.f32 %v383_v12 }
 0xd3e   :  { %387 = vmin.xlane.f32.xlu1 %v386_v6 }
 0xdb1   :  { %v388_v14 = vpop.xlane.xlu1 %387 }
 0xdb2   :  { %vm389_vm15 = vcmp.eq.f32.partialorder %v386_v6, %v388_v14  ;;  %v394_v21 = vcvt.f32.s32 %v388_v14 }
 0xdb3   :  { %v390_v15 = vsel %vm389_vm15, %v385_v7, inf }
 0xdb4   :  { %391 = vmin.xlane.f32.xlu2 %v390_v15  ;;  %v395_v18 = vshll.u32 %v394_v21, 16 }
 0xdcc   :  { %404 = vrot.lane.b32.xlu2 %v606_v11, %s463_s7  ;;  %v414_v11 = vrot.slane %v538_v49, 1 }
 0xdce   :  { %v415_v31 = vsel %vm102_vm7, %v413_v28, %v414_v11 }
 0xe27   :  { %v392_v17 = vpop.xlane.xlu2 %391 }
 0xe28   :  { %v393_v20 = vcvt.f32.s32 %v392_v17 }
 0xe2a   :  { %v396_v23 = vadd.s32 %v395_v18, %v393_v20 }
 0xe2c   :  { %vm397_vm0 = vcmp.eq.s32.totalorder %v382_v19, %v396_v23 }
 0xe2d   :  { %v398_v22 = vsel %vm397_vm0, %v590_v51, 0.0 }
 0xe2e   :  { %399 = vadd.xlane.f32.xlu0 %v398_v22 }
 0xe2f   :  { %v405_v25 = vpop.permute.xlu2 %404 }
 0xe30   :  { %v420_v27 = vsel %vm419_vm2, %v418_v26, %v405_v25 }
 0xe31   :  { %v422_v30 = vsel %vm421_vm3, %v420_v27, %v409_v29 }
 0xe32   :  { %v424_v51 = vsel %vm423_vm4, %v422_v30, %v415_v31 }
 0xe33   :  { %v426_v0 = vsel %vm425_vm5, %v424_v51, %v593_v55 }
 0xe34   :  { %v428_v9 = vsel %vm427_vm6, %v426_v0, %v613_v41 }
 0xea1   :  { %v400_v8 = vpop.xlane.xlu0 %399 }
 0xea2   :  { %v430_v32 = vsel %vm429_vm8, %v428_v9, %v400_v8 }
 0xea3   :  { %432 = vst.msk [vmem:[%s644_s3] sm:$0xff] %vm431_vm9, %v430_v32 }

</bundles_post_ra>
